<compile_context>
chip_gen: v7x
topology: tpu7x:2x2x1
jax: 0.10.0
libtpu: 0.0.40
codegen_flags: <defaults>
</compile_context>

<pallas_src>
import jax
import jax.numpy as jnp
from jax.experimental import pallas as pl
from jax.experimental.pallas import tpu as pltpu

_TARGET_BLOCK_BYTES = 4 * 1024 * 1024   # per-buffer tile; ~16 MiB resident w/ dbl-buffering
_MIN_GRID_STEPS = 8                     # keep both v7x TensorCores busy + pipeline overlap
_LANE_CANDIDATES = (1024, 512, 256, 128)


def _hsigmoid_kernel(x_ref, o_ref):
    x = x_ref[...]
    zero = jnp.asarray(0.0, dtype=x.dtype)
    three = jnp.asarray(3.0, dtype=x.dtype)
    six = jnp.asarray(6.0, dtype=x.dtype)
    # relu6(x + 3) / 6 ; true divide keeps bit-exact parity with the reference.
    y = jnp.clip(x + three, zero, six) / six
    o_ref[...] = y.astype(o_ref.dtype)


def _sublane_multiple(dtype):
    # native sublane packing: 8 for 32-bit, 16 for 16-bit, 32 for 8-bit dtypes
    return max(8, 32 // jnp.dtype(dtype).itemsize)


def _choose_lane(n):
    """Largest lane-dense width that divides n (prefer rows >= 8); None if n % 128 != 0."""
    for lane in _LANE_CANDIDATES:
        if n % lane == 0 and n // lane >= 8:
            return lane
    for lane in _LANE_CANDIDATES:
        if n % lane == 0:
            return lane
    return None


def _hsigmoid_2d(x2d):
    rows, lane = x2d.shape
    dtype = x2d.dtype
    itemsize = jnp.dtype(dtype).itemsize
    sub = _sublane_multiple(dtype)

    if rows < sub:
        # block dim equals the full array dim (allowed by the (8,128) rule)
        tile_r = rows
    else:
        tile_r = (_TARGET_BLOCK_BYTES // (lane * itemsize)) // sub * sub
        tile_r = max(sub, min(tile_r, (rows // sub) * sub))
        # shrink until the (parallel) row axis has enough steps to shard across
        # v7x's two TensorCores and to keep the DMA pipeline fed
        while -(-rows // tile_r) < _MIN_GRID_STEPS and tile_r >= 2 * sub:
            tile_r = max(sub, (tile_r // 2) // sub * sub)

    grid = (-(-rows // tile_r),)  # cdiv: ragged last block is masked by Pallas
    block_bytes = tile_r * lane * itemsize
    vmem_limit = min(64 * 1024 * 1024,
                     max(32 * 1024 * 1024, 4 * block_bytes + 4 * 1024 * 1024))

    return pl.pallas_call(
        _hsigmoid_kernel,
        out_shape=jax.ShapeDtypeStruct(x2d.shape, dtype),
        grid=grid,
        in_specs=[pl.BlockSpec((tile_r, lane), lambda i: (i, 0))],
        out_specs=pl.BlockSpec((tile_r, lane), lambda i: (i, 0)),
        compiler_params=pltpu.CompilerParams(
            dimension_semantics=("parallel",),
            vmem_limit_bytes=vmem_limit,
        ),
        cost_estimate=pl.CostEstimate(
            flops=4 * rows * lane,
            transcendentals=0,
            bytes_accessed=2 * rows * lane * itemsize,
        ),
    )(x2d)


def hsigmoid(x):
    """Hsigmoid forward: relu6(x + 3) / 6. Any shape; hot path runs in Pallas."""
    orig_shape = x.shape
    n = x.size
    if n == 0:
        return x

    lane = _choose_lane(n)
    flat = x.reshape(-1)
    padded = False
    if lane is None:
        # Rare fallback (numel not a multiple of 128): minimal pad to one slab
        # row width.  This costs one extra HBM pass; common conv shapes never
        # take this path.
        lane = _LANE_CANDIDATES[0]
        total = -(-n // lane) * lane
        flat = jnp.pad(flat, (0, total - n))
        padded = True

    rows = flat.size // lane
    out2d = _hsigmoid_2d(flat.reshape(rows, lane))

    out = out2d.reshape(-1)
    if padded:
        out = out[:n]
    return out.reshape(orig_shape)


if __name__ == "__main__":
    key = jax.random.PRNGKey(0)
    k1, k2, k3 = jax.random.split(key, 3)

    # NCHW, like the PyTorch module's typical conv-activation usage.
    x = jax.random.normal(k1, (2, 4, 16, 16), dtype=jnp.float32) * 4.0
    y = jax.block_until_ready(hsigmoid(x))
    ref = jnp.clip(x + 3.0, 0.0, 6.0) / 6.0
    assert y.shape == x.shape and y.dtype == x.dtype
    assert jnp.max(jnp.abs(y - ref)) < 1e-6

    # Exercise the zero-pad fallback path (numel not a multiple of 128).
    x2 = jax.random.normal(k2, (3, 5, 7), dtype=jnp.float32) * 4.0
    y2 = jax.block_until_ready(hsigmoid(x2))
    ref2 = jnp.clip(x2 + 3.0, 0.0, 6.0) / 6.0
    assert y2.shape == x2.shape and jnp.max(jnp.abs(y2 - ref2)) < 1e-6

    # Exercise a multi-step grid with a ragged last row-block (rows=13, tile=8).
    x3 = jax.random.normal(k3, (2, 13, 512), dtype=jnp.float32) * 4.0
    y3 = jax.block_until_ready(hsigmoid(x3))
    ref3 = jnp.clip(x3 + 3.0, 0.0, 6.0) / 6.0
    assert y3.shape == x3.shape and jnp.max(jnp.abs(y3 - ref3)) < 1e-6

    print("KERNEL_OK")
</pallas_src>

<mosaic_0001>
module attributes {stable_mosaic.version = 11 : i64} {
  func.func @_hsigmoid_kernel(%arg0: i32, %arg1: memref<8x256xf32, #tpu.memory_space<vmem>>, %arg2: memref<8x256xf32, #tpu.memory_space<vmem>>) attributes {dimension_semantics = [#tpu.dimension_semantics<parallel>], iteration_bounds = array<i64: 1>, scalar_prefetch = 0 : i64, scratch_operands = 0 : i64, tpu.core_type = #tpu.core_type<tc>, window_params = [{transform_indices = @transform_0, window_bounds = array<i64: 8, 256>}, {transform_indices = @transform_1, window_bounds = array<i64: 8, 256>}]} {
    %c0 = arith.constant 0 : index
    %c0_0 = arith.constant 0 : index
    %0 = vector.load %arg1[%c0, %c0_0] : memref<8x256xf32, #tpu.memory_space<vmem>>, vector<8x256xf32>
    %cst = arith.constant 3.000000e+00 : f32
    %1 = vector.broadcast %cst : f32 to vector<8x256xf32>
    %2 = arith.addf %0, %1 : vector<8x256xf32>
    %cst_1 = arith.constant 0.000000e+00 : f32
    %cst_2 = arith.constant 6.000000e+00 : f32
    %3 = vector.broadcast %cst_1 : f32 to vector<8x256xf32>
    %4 = arith.maximumf %3, %2 : vector<8x256xf32>
    %5 = vector.broadcast %cst_2 : f32 to vector<8x256xf32>
    %6 = arith.minimumf %5, %4 : vector<8x256xf32>
    %cst_3 = arith.constant 6.000000e+00 : f32
    %7 = vector.broadcast %cst_3 : f32 to vector<8x256xf32>
    %8 = arith.divf %6, %7 : vector<8x256xf32>
    %c0_4 = arith.constant 0 : index
    %c0_5 = arith.constant 0 : index
    %9 = vector.load %arg2[%c0_4, %c0_5] : memref<8x256xf32, #tpu.memory_space<vmem>>, vector<8x256xf32>
    tpu.vector_store %arg2[%c0_4, %c0_5], %8 {strides = array<i32>} : memref<8x256xf32, #tpu.memory_space<vmem>>, vector<8x256xf32>,
    return
  }
  func.func @transform_0(%arg0: i32) -> (i32, i32) {
    %c0_i32 = arith.constant 0 : i32
    %c0_i32_0 = arith.constant 0 : i32
    return %arg0, %c0_i32 : i32, i32
  }
  func.func @transform_1(%arg0: i32) -> (i32, i32) {
    %c0_i32 = arith.constant 0 : i32
    %c0_i32_0 = arith.constant 0 : i32
    return %arg0, %c0_i32 : i32, i32
  }
}

</mosaic_0001>

<bundles_post_ra>
// kernel: tpu_custom_call.1
= control target key start
LH: loop header
LB: loop body
LE: loop exit
PB: predicated region body
PF: predicated region fallthrough
CT: control target
= control target key end

     0   :  { %6 = vsyncpa [#allocation3], 0  ;;  %s135_s0 = inlined_call_operand.hbm [shape: f32[8,256], index: 0, kind: input, shape index: {}]   ;;  %s136_s1 = inlined_call_operand.hbm [shape: f32[8,256], index: 1, kind: output, shape index: {}]  }
   0x1   :  { %7 = vsyncpa [#allocation4], 0  ;;  %s99_s6 = smov [#allocation2]   ;;  %s51_s10 = scalar_lea.hbm %s135_s0, 256 }
   0x2   :  { %s14_s7 = sshll.u32 %s99_s6, 4  ;;  %p52_p0 = scmp.ne.s32.totalorder %s135_s0, %s51_s10  ;;  %s15_s7 = int_to_ptr.vmem [resolvable:$true] %s14_s7 }
   0x3   :  { %p55_p1 = scmp.lt.u32.totalorder %s51_s10, %s135_s0 }
   0x5   :  { %p57_p2 = pnand %p55_p1, %p52_p0 }
   0x7   :  { %60 = shalt.err (!%p57_p2)
}
   0x8   :  { %s61_s15 = scalar_lea.vmem %s15_s7, 256  ;;  %p66_p4 = scmp.lt.s32.totalorder %s15_s7, %s15_s7 }
   0x9   :  { %p62_p3 = scmp.ne.s32.totalorder %s15_s7, %s61_s15  ;;  %p67_p5 = scmp.lt.s32.totalorder %s61_s15, %s61_s15 }
   0xb   :  { %p68_p6 = por %p67_p5, %p66_p4 }
   0xd   :  { %p69_p7 = pnand %p68_p6, %p62_p3 }
   0xf   :  { %72 = shalt.err (!%p69_p7)
}
  0x10   :  { %17 = dma.hbm_to_vmem [thread:$0]  %s135_s0, 256, %s15_s7, [#allocation3]  }
  0x11   :  { %95 = dma.done.wait [#allocation3], 256  }
  0x12   :  { %96 = vsyncadd [#allocation3], 4294967040  ;;  %v21_v0 = vld [vmem:[#allocation2] sm:$0xff]  ;;  %v22_v1 = vld [vmem:[#allocation2 + $0x8] sm:$0xff]  ;;  %s100_s18 = smov [#allocation5]  }
  0x13   :  { %v23_v2 = vadd.f32 3.0, %v21_v0  ;;  %v24_v3 = vadd.f32 3.0, %v22_v1  ;;  %s40_s19 = sshll.u32 %s100_s18, 4  ;;  %s41_s19 = int_to_ptr.vmem [resolvable:$true] %s40_s19 }
  0x14   :  { %s73_s20 = scalar_lea.vmem %s41_s19, 256  ;;  %p78_p9 = scmp.lt.s32.totalorder %s41_s19, %s41_s19 }
  0x15   :  { %v25_v4 = vmax.f32 %v23_v2, 0.0  ;;  %v26_v5 = vmax.f32 %v24_v3, 0.0  ;;  %p74_p8 = scmp.ne.s32.totalorder %s41_s19, %s73_s20  ;;  %p79_p10 = scmp.lt.s32.totalorder %s73_s20, %s73_s20 }
  0x17   :  { %v27_v6 = vmin.f32 %v25_v4, 6.0  ;;  %v28_v7 = vmin.f32 %v26_v5, 6.0  ;;  %p80_p11 = por %p79_p10, %p78_p9 }
  0x19   :  { %v30_v8 = vmul.f32 0.16666667, %v27_v6  ;;  %v31_v9 = vmul.f32 0.16666667, %v28_v7  ;;  %p81_p12 = pnand %p80_p11, %p74_p8 }
  0x1b   :  { %32 = vst [vmem:[#allocation5] sm:$0xff] %v30_v8  ;;  %33 = vst [vmem:[#allocation5 + $0x8] sm:$0xff] %v31_v9 }
  0x1c   :  { %84 = shalt.err (!%p81_p12)
}
  0x1d   :  { %s85_s22 = scalar_lea.hbm %s136_s1, 256 }
  0x1e   :  { %p86_p13 = scmp.ne.s32.totalorder %s136_s1, %s85_s22  ;;  %p89_p0 = scmp.lt.u32.totalorder %s85_s22, %s136_s1 }
  0x20   :  { %p91_p1 = pnand %p89_p0, %p86_p13 }
  0x22   :  { %94 = shalt.err (!%p91_p1)
}
  0x23   :  { %43 = dma.vmem_to_hbm [thread:$0]  %s41_s19, 256, %s136_s1, [#allocation4]  }
  0x24   :  { %97 = dma.done.wait [#allocation4], 256  }
  0x25   :  { %98 = vsyncadd [#allocation4], 4294967040 }
  0x26   :  { %47 = vsyncpa [#allocation3], 1 }
  0x27   :  { %48 = vsyncpa [#allocation4], 1 }

</bundles_post_ra>
